<compile_context>
chip_gen: v5e
topology: v5e:2x2
jax: 0.10.0
libtpu: 0.0.40
codegen_flags: <defaults>
</compile_context>

<pallas_src>
import jax
import jax.numpy as jnp
from jax.experimental import pallas as pl
from jax.experimental.pallas import tpu as pltpu

_LANE = 128  # lane-dense multiple


def _round_up(n, m):
    return ((n + m - 1) // m) * m


def _fused_mlp_kernel(*refs):
    """refs = (x_ref, w0_ref, ..., w_{L-1}_ref, o_ref).

    h = x; for each layer: h = bf16(h) @ W_l (bf16, pre-transposed, lane-padded)
    with f32 accumulation; abs() fused after every layer except the last.
    All intermediates stay in vregs/VMEM; only the final tile is stored.
    """
    x_ref = refs[0]
    w_refs = refs[1:-1]
    o_ref = refs[-1]

    h = x_ref[...]  # (tb, in_padded) f32
    n = len(w_refs)
    for i, w_ref in enumerate(w_refs):
        h = jnp.dot(h.astype(jnp.bfloat16), w_ref[...],
                    preferred_element_type=jnp.float32)
        if i < n - 1:
            h = jnp.abs(h)
    o_ref[...] = h.astype(o_ref.dtype)


def _vmem_limit_bytes(weights, tb, in_padded, out_padded):
    """Weights (single-buffered bf16) + double-buffered x/y tiles + working set."""
    need = sum(int(w.size) * w.dtype.itemsize for w in weights)  # Buffered(1)
    need += 2 * tb * in_padded * 4          # x tile, f32, double-buffered
    need += 2 * tb * out_padded * 4         # y tile, f32, double-buffered
    max_dim = max([in_padded, out_padded] + [int(w.shape[1]) for w in weights])
    need += tb * max_dim * (4 + 2)          # f32 intermediate + bf16 cast copy
    need = int(need * 1.25)                 # ~20-25% headroom
    try:
        cap = int(pltpu.get_tpu_info().vmem_capacity_bytes) * 3 // 4
    except Exception:
        cap = 48 << 20                      # safe even on v7x (64 MiB physical)
    return max(32 << 20, min(need, cap))


def fused_mlp_pallas(x2d, weights_t_padded, *, tile_b=512):
    """Run the whole MLP in one pallas_call, tiled over the batch dimension.

    x2d:              (B, in_features) f32
    weights_t_padded: list of bf16 (in_dim_padded, out_dim_padded), dims % 128 == 0
    Returns (B, out_padded) f32 (caller slices the valid output columns).
    """
    B, in_features = x2d.shape
    in_padded = weights_t_padded[0].shape[0]
    out_padded = weights_t_padded[-1].shape[1]

    # Pad K of the first matmul to a lane multiple.  The extra W0 rows are zero,
    # so the extra zero x columns contribute exactly 0.  (No-op when already 128-aligned.)
    if in_features != in_padded:
        x2d = jnp.pad(x2d, ((0, 0), (0, in_padded - in_features)))

    # Batch tile: multiple of 16 (bf16 packs 2 rows per sublane).  No batch pad:
    # the ragged last block's out-of-range rows are never written back and each
    # output row depends only on its own input row.
    tb = _round_up(B, 16) if B <= tile_b else tile_b
    grid = (pl.cdiv(B, tb),)

    in_specs = [pl.BlockSpec((tb, in_padded), lambda i: (i, 0))]
    for w in weights_t_padded:
        # Grid-invariant weights: same block every step, single-buffered,
        # stay resident in VMEM for the whole kernel.
        in_specs.append(
            pl.BlockSpec(w.shape, lambda i: (0, 0),
                         pipeline_mode=pl.Buffered(1)))
    out_spec = pl.BlockSpec((tb, out_padded), lambda i: (i, 0))

    # TODO(synk): on v7x (64 MiB VMEM), if resident bf16 weights exceed ~48 MiB,
    # switch to a weight-streaming path (memory_space=pl.ANY + pltpu.emit_pipeline
    # over K/N tiles, or an extra "arbitrary" grid axis over layers/K).
    # TODO(synk): on v7x, verify in xprof that the batch axis is actually split
    # across the 2 TensorCores; if not, use pltpu.CORE_PARALLEL / pl.core_map.
    return pl.pallas_call(
        _fused_mlp_kernel,
        out_shape=jax.ShapeDtypeStruct((B, out_padded), jnp.float32),
        grid=grid,
        in_specs=in_specs,
        out_specs=out_spec,
        compiler_params=pltpu.CompilerParams(
            dimension_semantics=("parallel",),
            vmem_limit_bytes=_vmem_limit_bytes(
                weights_t_padded, tb, in_padded, out_padded)),
    )(x2d, *weights_t_padded)


class FullyConnectedPallas:
    """JAX/Pallas port of deep.models.FullyConnected forward pass.

    weight_init='UNIFORM' in the reference means "default nn.Linear init", i.e.
    U(-1/sqrt(fan_in), 1/sqrt(fan_in)); reproduced deterministically with JAX PRNG.
    DFALayer / DFA are identity in the forward pass (gradient hooks only).
    """

    def __init__(self, input_size=784, output_size=10, hidden_size=10,
                 n_layers=2, activation='abs', seed=0):
        assert activation == 'abs', "only the module default ('abs') is implemented"
        self.input_size = input_size
        self.output_size = output_size
        self.n_layers = n_layers

        sizes = [input_size] + [hidden_size] * (n_layers - 1) + [output_size]
        key = jax.random.PRNGKey(seed)

        # PyTorch nn.Linear layout (out_features, in_features), f32 — kept for
        # reference checking.
        self.weights = []
        for l in range(n_layers):
            fan_in, fan_out = sizes[l], sizes[l + 1]
            key, sub = jax.random.split(key)
            bound = 1.0 / (fan_in ** 0.5)
            w = jax.random.uniform(sub, (fan_out, fan_in), dtype=jnp.float32,
                                   minval=-bound, maxval=bound)
            self.weights.append(w)

        # Kernel-side weights: transposed to (in, out), zero-padded so every
        # in/out dim is a multiple of 128 lanes, stored in bf16.  Padded output
        # columns produce zero activations (abs(0)=0) and the matching padded
        # input rows of the next layer are zero, so the padding is exact.
        padded_out = ([_round_up(hidden_size, _LANE)] * (n_layers - 1)
                      + [_round_up(output_size, _LANE)])
        padded_in = [_round_up(input_size, _LANE)] + padded_out[:-1]
        self.weights_t_padded = []
        for l, w in enumerate(self.weights):
            wt = w.T  # (in, out)
            wt_p = jnp.zeros((padded_in[l], padded_out[l]), jnp.float32)
            wt_p = wt_p.at[:wt.shape[0], :wt.shape[1]].set(wt)
            self.weights_t_padded.append(wt_p.astype(jnp.bfloat16))

    def __call__(self, x):
        # flatten: x.reshape(x.shape[0], -1)   (glue, plain JAX)
        x2d = x.reshape(x.shape[0], -1).astype(jnp.float32)
        # whole MLP (all matmuls + abs) fused in one Pallas kernel
        y = fused_mlp_pallas(x2d, self.weights_t_padded)
        y = y[:, :self.output_size]
        if self.output_size == 1:
            return y.squeeze(1)
        return y


if __name__ == "__main__":
    # Small shapes consistent with the module: NCHW input flattened to 128 features.
    B, C, H, W = 8, 1, 8, 16            # 1*8*16 = 128 input features
    input_size = C * H * W
    hidden_size = 32
    output_size = 10
    n_layers = 2

    key = jax.random.PRNGKey(0)
    x = jax.random.normal(key, (B, C, H, W), dtype=jnp.float32)

    model = FullyConnectedPallas(input_size=input_size, output_size=output_size,
                                 hidden_size=hidden_size, n_layers=n_layers,
                                 activation='abs', seed=0)

    out = jax.block_until_ready(model(x))

    # Sanity check against a pure-JAX f32 reference of the same math
    # (kernel runs bf16 MXU operands with f32 accumulation -> loose tolerance).
    ref = x.reshape(B, -1)
    for l in range(n_layers - 1):
        ref = jnp.abs(ref @ model.weights[l].T)
    ref = ref @ model.weights[-1].T
    assert out.shape == (B, output_size)
    assert jnp.allclose(out, ref, atol=3e-2, rtol=3e-2), (
        "max abs err = %g" % float(jnp.max(jnp.abs(out - ref))))

    print("KERNEL_OK")
</pallas_src>

<mosaic_0001>
module attributes {stable_mosaic.version = 11 : i64} {
  func.func @_fused_mlp_kernel(%arg0: i32, %arg1: memref<16x128xf32, #tpu.memory_space<vmem>>, %arg2: memref<128x128xbf16, #tpu.memory_space<vmem>>, %arg3: memref<128x128xbf16, #tpu.memory_space<vmem>>, %arg4: memref<16x128xf32, #tpu.memory_space<vmem>>) attributes {dimension_semantics = [#tpu.dimension_semantics<parallel>], iteration_bounds = array<i64: 1>, scalar_prefetch = 0 : i64, scratch_operands = 0 : i64, tpu.core_type = #tpu.core_type<tc>, window_params = [{transform_indices = @transform_0, window_bounds = array<i64: 16, 128>}, {pipeline_mode = #tpu.pipeline_mode<synchronous>, transform_indices = @transform_1, window_bounds = array<i64: 128, 128>}, {pipeline_mode = #tpu.pipeline_mode<synchronous>, transform_indices = @transform_2, window_bounds = array<i64: 128, 128>}, {transform_indices = @transform_3, window_bounds = array<i64: 16, 128>}]} {
    %c0 = arith.constant 0 : index
    %c0_0 = arith.constant 0 : index
    %0 = vector.load %arg1[%c0, %c0_0] : memref<16x128xf32, #tpu.memory_space<vmem>>, vector<16x128xf32>
    %1 = arith.truncf %0 : vector<16x128xf32> to vector<16x128xbf16>
    %c0_1 = arith.constant 0 : index
    %c0_2 = arith.constant 0 : index
    %2 = vector.load %arg2[%c0_1, %c0_2] : memref<128x128xbf16, #tpu.memory_space<vmem>>, vector<128x128xbf16>
    %cst = arith.constant dense<0.000000e+00> : vector<16x128xf32>
    %3 = tpu.matmul %1, %2, %cst {dimension_numbers = #tpu.dot_dimension_numbers<[1], [0], [0], [1], [0, 0, 1, 1], [], []>} : vector<16x128xbf16>, vector<128x128xbf16>, vector<16x128xf32> -> vector<16x128xf32>
    %4 = math.absf %3 : vector<16x128xf32>
    %5 = arith.truncf %4 : vector<16x128xf32> to vector<16x128xbf16>
    %c0_3 = arith.constant 0 : index
    %c0_4 = arith.constant 0 : index
    %6 = vector.load %arg3[%c0_3, %c0_4] : memref<128x128xbf16, #tpu.memory_space<vmem>>, vector<128x128xbf16>
    %cst_5 = arith.constant dense<0.000000e+00> : vector<16x128xf32>
    %7 = tpu.matmul %5, %6, %cst_5 {dimension_numbers = #tpu.dot_dimension_numbers<[1], [0], [0], [1], [0, 0, 1, 1], [], []>} : vector<16x128xbf16>, vector<128x128xbf16>, vector<16x128xf32> -> vector<16x128xf32>
    %c0_6 = arith.constant 0 : index
    %c0_7 = arith.constant 0 : index
    %8 = vector.load %arg4[%c0_6, %c0_7] : memref<16x128xf32, #tpu.memory_space<vmem>>, vector<16x128xf32>
    tpu.vector_store %arg4[%c0_6, %c0_7], %7 {strides = array<i32>} : memref<16x128xf32, #tpu.memory_space<vmem>>, vector<16x128xf32>,
    return
  }
  func.func @transform_0(%arg0: i32) -> (i32, i32) {
    %c0_i32 = arith.constant 0 : i32
    %c0_i32_0 = arith.constant 0 : i32
    return %arg0, %c0_i32 : i32, i32
  }
  func.func @transform_1(%arg0: i32) -> (i32, i32) {
    %c0_i32 = arith.constant 0 : i32
    %c0_i32_0 = arith.constant 0 : i32
    %c0_i32_1 = arith.constant 0 : i32
    return %c0_i32, %c0_i32_0 : i32, i32
  }
  func.func @transform_2(%arg0: i32) -> (i32, i32) {
    %c0_i32 = arith.constant 0 : i32
    %c0_i32_0 = arith.constant 0 : i32
    %c0_i32_1 = arith.constant 0 : i32
    return %c0_i32, %c0_i32_0 : i32, i32
  }
  func.func @transform_3(%arg0: i32) -> (i32, i32) {
    %c0_i32 = arith.constant 0 : i32
    %c0_i32_0 = arith.constant 0 : i32
    return %arg0, %c0_i32 : i32, i32
  }
}

</mosaic_0001>

<bundles_post_ra>
// kernel: tpu_custom_call.1
= control target key start
LH: loop header
LB: loop body
LE: loop exit
PB: predicated region body
PF: predicated region fallthrough
CT: control target
= control target key end

     0   :  { %8 = vsyncpa [#allocation3], 0  ;;  %s482_s0 = inlined_call_operand.hbm [shape: f32[8,128], index: 0, kind: input, shape index: {}]   ;;  %s483_s1 = inlined_call_operand.hbm [shape: bf16[128,128], index: 1, kind: input, shape index: {}]   ;;  %s484_s2 = inlined_call_operand.hbm [shape: bf16[128,128], index: 2, kind: input, shape index: {}]   ;;  %s485_s3 = inlined_call_operand.hbm [shape: f32[8,128], index: 3, kind: output, shape index: {}]  }
   0x1   :  { %9 = vsyncpa [#allocation6], 0 }
   0x2   :  { %10 = vsyncpa [#allocation4], 0  ;;  %s28_s14 = sshll.u32 %s483_s1, 4  ;;  %s29_s14 = int_to_ptr.hbm [resolvable:$true] %s28_s14 }
   0x3   :  { %14 = vsyncadd [#allocation3], 128  ;;  %s436_s15 = smov [#allocation5]   ;;  %s15_s19 = sshll.u32 %s482_s0, 4  ;;  %s16_s19 = int_to_ptr.hbm [resolvable:$true] %s15_s19 }
   0x4   :  { %s30_s16 = sshll.u32 %s436_s15, 4  ;;  %s437_s20 = smov 64   ;;  %s31_s16 = int_to_ptr.vmem [resolvable:$true] %s30_s16 }
   0x5   :  { %s438_s21 = smov 4   ;;  %s439_s22 = smov [#allocation2]  }
   0x6   :  { %36 = dma.hbm_to_vmem [thread:$0]  %s29_s14, 1024, %s31_s16, [#allocation6], %s437_s20, %s437_s20, %s438_s21  }
   0x7   :  { %s17_s23 = sshll.u32 %s439_s22, 4  ;;  %s440_s24 = smov 128   ;;  %s18_s23 = int_to_ptr.vmem [resolvable:$true] %s17_s23 }
   0x8   :  { %s441_s25 = smov 8   ;;  %s41_s27 = sshll.u32 %s484_s2, 4  ;;  %s42_s27 = int_to_ptr.hbm [resolvable:$true] %s41_s27 }
   0x9   :  { %23 = dma.hbm_to_vmem [thread:$0]  %s16_s19, 128, %s18_s23, [#allocation3], %s440_s24, %s440_s24, %s441_s25  }
   0xa   :  { %s442_s28 = smov [#allocation7]  }
   0xb   :  { %s43_s0 = sshll.u32 %s442_s28, 4  ;;  %s44_s0 = int_to_ptr.vmem [resolvable:$true] %s43_s0 }
   0xc   :  { %49 = dma.hbm_to_vmem [thread:$0]  %s42_s27, 1024, %s44_s0, [#allocation6], %s437_s20, %s437_s20, %s438_s21  }
   0xd   :  { %430 = dma.done.wait [#allocation3], 256  }
   0xe   :  { %431 = vsyncadd [#allocation3], 4294967040 }
   0xf   :  { %432 = dma.done.wait [#allocation6], 2048  }
  0x10   :  { %433 = vsyncadd [#allocation6], 4294965248  ;;  %v317_v0 = vld [vmem:[#allocation5 + $0x38] sm:$0xff]  ;;  %v316_v1 = vld [vmem:[#allocation5 + $0x30] sm:$0xff] }
  0x11   :  { %129 = vmatpush.bf16.msra.mxu0 %v317_v0  ;;  %v325_v2 = vld [vmem:[#allocation7 + $0x38] sm:$0xff]  ;;  %v324_v3 = vld [vmem:[#allocation7 + $0x30] sm:$0xff]  ;;  %v315_v4 = vld [vmem:[#allocation5 + $0x28] sm:$0xff] }
  0x12   :  { %210 = vmatpush.bf16.msra.mxu1 %v325_v2  ;;  %v323_v5 = vld [vmem:[#allocation7 + $0x28] sm:$0xff]  ;;  %v314_v6 = vld [vmem:[#allocation5 + $0x20] sm:$0xff]  ;;  %v313_v8 = vld [vmem:[#allocation5 + $0x18] sm:$0xff] }
  0x13   :  { %v322_v7 = vld [vmem:[#allocation7 + $0x20] sm:$0xff]  ;;  %v321_v9 = vld [vmem:[#allocation7 + $0x18] sm:$0xff]  ;;  %v312_v10 = vld [vmem:[#allocation5 + $0x10] sm:$0xff] }
  0x14   :  { %v311_v11 = vld [vmem:[#allocation5 + $0x8] sm:$0xff]  ;;  %v310_v12 = vld [vmem:[#allocation5] sm:$0xff]  ;;  %v62_v13 = vld [vmem:[#allocation2] sm:$0xff] }
  0x15   :  { %130 = vmatpush.bf16.msra.mxu0 %v316_v1  ;;  %v63_v14 = vld [vmem:[#allocation2 + $0x8] sm:$0xff]  ;;  %v320_v16 = vld [vmem:[#allocation7 + $0x10] sm:$0xff]  ;;  %v319_v17 = vld [vmem:[#allocation7 + $0x8] sm:$0xff] }
  0x16   :  { %211 = vmatpush.bf16.msra.mxu1 %v324_v3  ;;  %v64_v15 = vpack.c.bf16 %v63_v14, %v62_v13  ;;  %v318_v18 = vld [vmem:[#allocation7] sm:$0xff] }
  0x19   :  { %131 = vmatpush.bf16.msra.mxu0 %v315_v4 }
  0x1a   :  { %212 = vmatpush.bf16.msra.mxu1 %v323_v5 }
  0x1d   :  { %132 = vmatpush.bf16.msra.mxu0 %v314_v6 }
  0x1e   :  { %213 = vmatpush.bf16.msra.mxu1 %v322_v7 }
  0x21   :  { %133 = vmatpush.bf16.msra.mxu0 %v313_v8 }
  0x22   :  { %214 = vmatpush.bf16.msra.mxu1 %v321_v9 }
  0x25   :  { %134 = vmatpush.bf16.msra.mxu0 %v312_v10 }
  0x26   :  { %215 = vmatpush.bf16.msra.mxu1 %v320_v16 }
  0x29   :  { %135 = vmatpush.bf16.msra.mxu0 %v311_v11 }
  0x2a   :  { %216 = vmatpush.bf16.msra.mxu1 %v319_v17 }
  0x2d   :  { %136 = vmatpush.bf16.msra.mxu0 %v310_v12 }
  0x2e   :  { %217 = vmatpush.bf16.msra.mxu1 %v318_v18 }
  0x30   :  { %137 = vmatmul.bf16.vlgmr.msra.gmra.mxu0 %v64_v15 }
  0xad   :  { %v138_v19 = vpop.f32.mrf.mxu0 }
  0xae   :  { %v143_v21 = vand.u32 2147483647, %v138_v19 }
  0xb5   :  { %v140_v20 = vpop.f32.mrf.mxu0 }
  0xb6   :  { %v144_v22 = vand.u32 2147483647, %v140_v20 }
  0xb8   :  { %v145_v23 = vpack.c.bf16 %v144_v22, %v143_v21 }
  0xba   :  { %218 = vmatmul.bf16.vlgmr.msra.gmra.mxu1 %v145_v23 }
 0x137   :  { %v219_v24 = vpop.f32.mrf.mxu1 }
 0x138   :  { %224 = vst [vmem:[#allocation8] sm:$0xff] %v219_v24 }
 0x13f   :  { %v221_v25 = vpop.f32.mrf.mxu1 }
 0x140   :  { %225 = vst [vmem:[#allocation8 + $0x8] sm:$0xff] %v221_v25 }
 0x141   :  { %229 = vsyncadd [#allocation4], 128  ;;  %s232_s30 = sshll.u32 %s485_s3, 4  ;;  %s443_s4 = smov [#allocation8]   ;;  %s233_s30 = int_to_ptr.hbm [resolvable:$true] %s232_s30 }
 0x142   :  { %s230_s5 = sshll.u32 %s443_s4, 4  ;;  %s231_s5 = int_to_ptr.vmem [resolvable:$true] %s230_s5 }
 0x143   :  { %238 = dma.vmem_to_hbm [thread:$0]  %s231_s5, 128, %s233_s30, [#allocation4], %s440_s24, %s440_s24, %s441_s25  }
 0x144   :  { %434 = dma.done.wait [#allocation4], 256  }
 0x145   :  { %435 = vsyncadd [#allocation4], 4294967040 }
 0x146   :  { %243 = vsyncpa [#allocation3], 1 }
 0x147   :  { %244 = vsyncpa [#allocation6], 1 }
 0x148   :  { %245 = vsyncpa [#allocation4], 1 }

</bundles_post_ra>
